<compile_context>
chip_gen: v7x
topology: tpu7x:2x2x1
jax: 0.10.0
libtpu: 0.0.40
codegen_flags: <defaults>
</compile_context>

<pallas_src>
import jax
import jax.numpy as jnp
import numpy as np
from jax import lax
from jax.experimental import pallas as pl
from jax.experimental.pallas import tpu as pltpu


# ------------------------- weight preprocessing ----------------------------

def _ct_phase_weights(ct_w, groups=4):
    """Grouped ConvTranspose weight (Cin, Cout/g, K, K) ->
       (w2p, w_eq) where
         w_eq[th, tw, ci, co]  : dense regular-conv equivalent (flipped taps,
                                 zeros off the group block diagonal)
         w2p[phase, co, (d*2+e)*Cin + ci] : per sub-pixel phase (py,px), the
                                 2x2 effective taps packed along K so each
                                 phase is a single (Cout, 4*Cin) matmul."""
    Cin, cpg, K, _ = ct_w.shape
    Cout = cpg * groups
    cin_per_g = Cin // groups
    w_flip = ct_w[:, :, ::-1, ::-1]                       # spatial flip
    w_eq = jnp.zeros((K, K, Cin, Cout), jnp.float32)
    for g in range(groups):
        for cl in range(cin_per_g):
            ci = g * cin_per_g + cl
            for ol in range(cpg):
                co = g * cpg + ol
                w_eq = w_eq.at[:, :, ci, co].set(w_flip[ci, ol])
    w2p = jnp.zeros((4, Cout, 4 * Cin), jnp.float32)
    for py in range(2):
        for px in range(2):
            ph = py * 2 + px
            for d in range(2):                            # d=0 -> iy=qy-1, d=1 -> iy=qy
                th = 2 * d + (1 - py)
                for e in range(2):
                    tw = 2 * e + (1 - px)
                    blk = (d * 2 + e) * Cin
                    w2p = w2p.at[ph, :, blk:blk + Cin].set(w_eq[th, tw].T)
    return w2p, w_eq


def init_params(key):
    k1, k2, k3, k4 = jax.random.split(key, 4)
    return dict(
        conv_w=0.1 * jax.random.normal(k1, (8, 3, 4, 4), jnp.float32),  # OIHW
        conv_b=0.1 * jax.random.normal(k2, (8,), jnp.float32),
        ct_w=0.1 * jax.random.normal(k3, (8, 1, 4, 4), jnp.float32),    # (Cin, Cout/g, K, K)
        ct_b=0.1 * jax.random.normal(k4, (4,), jnp.float32),
    )


# ----------------------------- fused forward -------------------------------

def model_forward(x_nchw, params):
    conv_w, conv_b = params["conv_w"], params["conv_b"]
    ct_w, ct_b = params["ct_w"], params["ct_b"]
    N, C_IN, H, W = x_nchw.shape
    C_MID, C_OUT, K1 = 8, 4, 4

    # conv1 geometry: pad=2, dilation=2, k=4 (eff. 7), stride=2
    OH1 = (H + 4 - 7) // 2 + 1
    OW1 = (W + 4 - 7) // 2 + 1
    KDIM = K1 * K1 * C_IN                 # 48
    M1 = OH1 * OW1                        # 49
    # transposed-conv phase geometry
    QH, QW = OH1 + 2, OW1 + 2             # per-phase output grid (output = 2*QH x 2*QW)
    PADW = OW1 + 3                        # flat row stride of the padded v1 layout
    PHW = QH * PADW                       # columns computed per phase (col % PADW == PADW-1 is junk)
    SCR_W = (QH + 1) * PADW + 8           # scratch lane width (>= max slice end)

    # ---- conv1 patch extraction: 16 static strided slices (no gather) ----
    xp = jnp.pad(x_nchw, ((0, 0), (0, 0), (2, 2), (2, 2)))
    taps = [xp[:, :, kh * 2:kh * 2 + 2 * OH1 - 1:2, kw * 2:kw * 2 + 2 * OW1 - 1:2]
            for kh in range(K1) for kw in range(K1)]          # each (N, C_IN, OH1, OW1)
    p1 = jnp.stack(taps, axis=1).reshape(N, KDIM, M1)          # (N, K, M) channel-minor K

    w1m = jnp.transpose(conv_w, (0, 2, 3, 1)).reshape(C_MID, KDIM)   # (Cout1, K)
    b1c = conv_b.reshape(C_MID, 1)
    w2p, _ = _ct_phase_weights(ct_w, groups=4)                        # (4, 4, 32)
    b2c = ct_b.reshape(C_OUT, 1)

    def kernel(p1_ref, w1_ref, b1_ref, w2_ref, b2_ref, out_ref, v1_ref):
        # ---- Conv2d(3,8,k=4,s=2,p=2,d=2): one MXU matmul, channel-first ----
        v1 = jnp.dot(w1_ref[...], p1_ref[0],
                     preferred_element_type=jnp.float32) + b1_ref[...]   # (C_MID, M1)
        # scatter v1 rows into the zero-padded flat layout: col = (1+iy)*PADW + 1 + ix
        v1_ref[...] = jnp.zeros_like(v1_ref)
        for iy in range(OH1):
            v1_ref[:, (iy + 1) * PADW + 1:(iy + 1) * PADW + 1 + OW1] = (
                v1[:, iy * OW1:(iy + 1) * OW1])
        # ---- ConvTranspose2d via sub-pixel phases: each output parity class is a
        #      2x2 conv on v1.  The 4 shifted views are concatenated once so every
        #      phase is a single (C_OUT, 4*C_MID) @ (4*C_MID, PHW) matmul, followed
        #      by the fused hardswish epilogue. ----
        big = jnp.concatenate(
            [v1_ref[:, d * PADW + e:d * PADW + e + PHW]
             for d in range(2) for e in range(2)], axis=0)               # (32, PHW)
        for ph in range(4):
            v2 = jnp.dot(w2_ref[ph], big,
                         preferred_element_type=jnp.float32) + b2_ref[...]   # (C_OUT, PHW)
            v5 = jnp.clip(v2 + 3.0, 0.0, 6.0)
            out_ref[0, ph] = v2 * v5 * (1.0 / 6.0)

    flops = N * (2 * C_MID * KDIM * M1 + 4 * 2 * C_OUT * 4 * C_MID * PHW)
    bytes_accessed = 4 * (p1.size + w1m.size + w2p.size + C_MID + C_OUT
                          + N * 4 * C_OUT * PHW)

    raw = pl.pallas_call(
        kernel,
        out_shape=jax.ShapeDtypeStruct((N, 4, C_OUT, PHW), jnp.float32),
        grid_spec=pltpu.PrefetchScalarGridSpec(
            num_scalar_prefetch=0,
            grid=(N,),
            in_specs=[
                pl.BlockSpec((1, KDIM, M1), lambda n: (n, 0, 0)),
                pl.BlockSpec((C_MID, KDIM), lambda n: (0, 0)),
                pl.BlockSpec((C_MID, 1), lambda n: (0, 0)),
                pl.BlockSpec((4, C_OUT, 4 * C_MID), lambda n: (0, 0, 0)),
                pl.BlockSpec((C_OUT, 1), lambda n: (0, 0)),
            ],
            out_specs=pl.BlockSpec((1, 4, C_OUT, PHW), lambda n: (n, 0, 0, 0)),
            scratch_shapes=[pltpu.VMEM((C_MID, SCR_W), jnp.float32)],
        ),
        compiler_params=pltpu.CompilerParams(
            dimension_semantics=("parallel",)),
        cost_estimate=pl.CostEstimate(flops=flops, transcendentals=0,
                                      bytes_accessed=bytes_accessed),
    )(p1, w1m, b1c, w2p, b2c)

    # parity interleave back to NCHW: oy = 2*qy + py, ox = 2*qx + px
    raw = raw.reshape(N, 2, 2, C_OUT, QH, PADW)[..., :QW]     # (n, py, px, co, qy, qx)
    out = jnp.transpose(raw, (0, 3, 4, 1, 5, 2)).reshape(N, C_OUT, 2 * QH, 2 * QW)
    return out


# ----------------------------- reference ----------------------------------

def reference_forward(x_nchw, params):
    """Pure-JAX (lax.conv) reference of the same semantics, for verification."""
    conv_w, conv_b = params["conv_w"], params["conv_b"]
    ct_w, ct_b = params["ct_w"], params["ct_b"]
    v1 = lax.conv_general_dilated(
        x_nchw, conv_w, window_strides=(2, 2), padding=((2, 2), (2, 2)),
        rhs_dilation=(2, 2), dimension_numbers=("NCHW", "OIHW", "NCHW"),
    ) + conv_b[None, :, None, None]
    _, w_eq = _ct_phase_weights(ct_w, groups=4)               # (KH, KW, Cin, Cout)
    w_oihw = jnp.transpose(w_eq, (3, 2, 0, 1))
    v2 = lax.conv_general_dilated(
        v1, w_oihw, window_strides=(1, 1), padding=((3, 5), (3, 5)),
        lhs_dilation=(2, 2), dimension_numbers=("NCHW", "OIHW", "NCHW"),
    ) + ct_b[None, :, None, None]
    v5 = jnp.clip(v2 + 3.0, 0.0, 6.0)
    return v2 * v5 / 6.0


if __name__ == "__main__":
    key = jax.random.PRNGKey(0)
    xkey, pkey = jax.random.split(key)
    x = jax.random.normal(xkey, (2, 3, 16, 16), jnp.float32)  # NCHW, like PyTorch
    params = init_params(pkey)

    fwd = jax.jit(model_forward)
    out = jax.block_until_ready(fwd(x, params))
    assert out.shape == (2, 4, 18, 18), out.shape

    ref = reference_forward(x, params)
    np.testing.assert_allclose(np.asarray(out), np.asarray(ref), rtol=1e-4, atol=1e-4)
    print("KERNEL_OK")
</pallas_src>

<mosaic_0001>
module attributes {stable_mosaic.version = 11 : i64} {
  func.func @kernel(%arg0: i32, %arg1: memref<1x48x49xf32, #tpu.memory_space<vmem>>, %arg2: memref<8x48xf32, #tpu.memory_space<vmem>>, %arg3: memref<8x1xf32, #tpu.memory_space<vmem>>, %arg4: memref<4x4x32xf32, #tpu.memory_space<vmem>>, %arg5: memref<4x1xf32, #tpu.memory_space<vmem>>, %arg6: memref<1x4x4x90xf32, #tpu.memory_space<vmem>>, %arg7: memref<8x108xf32, #tpu.memory_space<vmem>>) attributes {dimension_semantics = [#tpu.dimension_semantics<parallel>], iteration_bounds = array<i64: 2>, scalar_prefetch = 0 : i64, scratch_operands = 1 : i64, tpu.core_type = #tpu.core_type<tc>, window_params = [{transform_indices = @transform_0, window_bounds = array<i64: 1, 48, 49>}, {pipeline_mode = #tpu.pipeline_mode<synchronous>, transform_indices = @transform_1, window_bounds = array<i64: 8, 48>}, {pipeline_mode = #tpu.pipeline_mode<synchronous>, transform_indices = @transform_2, window_bounds = array<i64: 8, 1>}, {pipeline_mode = #tpu.pipeline_mode<synchronous>, transform_indices = @transform_3, window_bounds = array<i64: 4, 4, 32>}, {pipeline_mode = #tpu.pipeline_mode<synchronous>, transform_indices = @transform_4, window_bounds = array<i64: 4, 1>}, {transform_indices = @transform_5, window_bounds = array<i64: 1, 4, 4, 90>}]} {
    %c0 = arith.constant 0 : index
    %c0_0 = arith.constant 0 : index
    %0 = vector.load %arg2[%c0, %c0_0] : memref<8x48xf32, #tpu.memory_space<vmem>>, vector<8x48xf32>
    %c0_1 = arith.constant 0 : index
    %c0_2 = arith.constant 0 : index
    %c0_3 = arith.constant 0 : index
    %1 = vector.load %arg1[%c0_1, %c0_2, %c0_3] : memref<1x48x49xf32, #tpu.memory_space<vmem>>, vector<1x48x49xf32>
    %2 = vector.shape_cast %1 : vector<1x48x49xf32> to vector<48x49xf32>
    %cst = arith.constant dense<0.000000e+00> : vector<8x49xf32>
    %3 = tpu.matmul %0, %2, %cst {dimension_numbers = #tpu.dot_dimension_numbers<[1], [0], [0], [1], [0, 0, 1, 1], [], []>} : vector<8x48xf32>, vector<48x49xf32>, vector<8x49xf32> -> vector<8x49xf32>
    %c0_4 = arith.constant 0 : index
    %c0_5 = arith.constant 0 : index
    %4 = vector.load %arg3[%c0_4, %c0_5] : memref<8x1xf32, #tpu.memory_space<vmem>>, vector<8x1xf32>
    %5 = vector.broadcast %4 : vector<8x1xf32> to vector<8x49xf32>
    %6 = arith.addf %3, %5 : vector<8x49xf32>
    %cst_6 = arith.constant 0.000000e+00 : f32
    %7 = vector.broadcast %cst_6 : f32 to vector<8x108xf32>
    %c0_7 = arith.constant 0 : index
    %c0_8 = arith.constant 0 : index
    %8 = vector.load %arg7[%c0_7, %c0_8] : memref<8x108xf32, #tpu.memory_space<vmem>>, vector<8x108xf32>
    tpu.vector_store %arg7[%c0_7, %c0_8], %7 {strides = array<i32>} : memref<8x108xf32, #tpu.memory_space<vmem>>, vector<8x108xf32>,
    %9 = vector.extract_strided_slice %6 {offsets = [0, 0], sizes = [8, 7], strides = [1, 1]} : vector<8x49xf32> to vector<8x7xf32>
    %c0_9 = arith.constant 0 : index
    %c11 = arith.constant 11 : index
    %10 = vector.load %arg7[%c0_9, %c11] : memref<8x108xf32, #tpu.memory_space<vmem>>, vector<8x7xf32>
    tpu.vector_store %arg7[%c0_9, %c11], %9 {strides = array<i32>} : memref<8x108xf32, #tpu.memory_space<vmem>>, vector<8x7xf32>,
    %11 = vector.extract_strided_slice %6 {offsets = [0, 7], sizes = [8, 7], strides = [1, 1]} : vector<8x49xf32> to vector<8x7xf32>
    %c0_10 = arith.constant 0 : index
    %c21 = arith.constant 21 : index
    %12 = vector.load %arg7[%c0_10, %c21] : memref<8x108xf32, #tpu.memory_space<vmem>>, vector<8x7xf32>
    tpu.vector_store %arg7[%c0_10, %c21], %11 {strides = array<i32>} : memref<8x108xf32, #tpu.memory_space<vmem>>, vector<8x7xf32>,
    %13 = vector.extract_strided_slice %6 {offsets = [0, 14], sizes = [8, 7], strides = [1, 1]} : vector<8x49xf32> to vector<8x7xf32>
    %c0_11 = arith.constant 0 : index
    %c31 = arith.constant 31 : index
    %14 = vector.load %arg7[%c0_11, %c31] : memref<8x108xf32, #tpu.memory_space<vmem>>, vector<8x7xf32>
    tpu.vector_store %arg7[%c0_11, %c31], %13 {strides = array<i32>} : memref<8x108xf32, #tpu.memory_space<vmem>>, vector<8x7xf32>,
    %15 = vector.extract_strided_slice %6 {offsets = [0, 21], sizes = [8, 7], strides = [1, 1]} : vector<8x49xf32> to vector<8x7xf32>
    %c0_12 = arith.constant 0 : index
    %c41 = arith.constant 41 : index
    %16 = vector.load %arg7[%c0_12, %c41] : memref<8x108xf32, #tpu.memory_space<vmem>>, vector<8x7xf32>
    tpu.vector_store %arg7[%c0_12, %c41], %15 {strides = array<i32>} : memref<8x108xf32, #tpu.memory_space<vmem>>, vector<8x7xf32>,
    %17 = vector.extract_strided_slice %6 {offsets = [0, 28], sizes = [8, 7], strides = [1, 1]} : vector<8x49xf32> to vector<8x7xf32>
    %c0_13 = arith.constant 0 : index
    %c51 = arith.constant 51 : index
    %18 = vector.load %arg7[%c0_13, %c51] : memref<8x108xf32, #tpu.memory_space<vmem>>, vector<8x7xf32>
    tpu.vector_store %arg7[%c0_13, %c51], %17 {strides = array<i32>} : memref<8x108xf32, #tpu.memory_space<vmem>>, vector<8x7xf32>,
    %19 = vector.extract_strided_slice %6 {offsets = [0, 35], sizes = [8, 7], strides = [1, 1]} : vector<8x49xf32> to vector<8x7xf32>
    %c0_14 = arith.constant 0 : index
    %c61 = arith.constant 61 : index
    %20 = vector.load %arg7[%c0_14, %c61] : memref<8x108xf32, #tpu.memory_space<vmem>>, vector<8x7xf32>
    tpu.vector_store %arg7[%c0_14, %c61], %19 {strides = array<i32>} : memref<8x108xf32, #tpu.memory_space<vmem>>, vector<8x7xf32>,
    %21 = vector.extract_strided_slice %6 {offsets = [0, 42], sizes = [8, 7], strides = [1, 1]} : vector<8x49xf32> to vector<8x7xf32>
    %c0_15 = arith.constant 0 : index
    %c71 = arith.constant 71 : index
    %22 = vector.load %arg7[%c0_15, %c71] : memref<8x108xf32, #tpu.memory_space<vmem>>, vector<8x7xf32>
    tpu.vector_store %arg7[%c0_15, %c71], %21 {strides = array<i32>} : memref<8x108xf32, #tpu.memory_space<vmem>>, vector<8x7xf32>,
    %c0_16 = arith.constant 0 : index
    %c0_17 = arith.constant 0 : index
    %23 = vector.load %arg7[%c0_16, %c0_17] : memref<8x108xf32, #tpu.memory_space<vmem>>, vector<8x90xf32>
    %c0_18 = arith.constant 0 : index
    %c1 = arith.constant 1 : index
    %24 = vector.load %arg7[%c0_18, %c1] : memref<8x108xf32, #tpu.memory_space<vmem>>, vector<8x90xf32>
    %c0_19 = arith.constant 0 : index
    %c10 = arith.constant 10 : index
    %25 = vector.load %arg7[%c0_19, %c10] : memref<8x108xf32, #tpu.memory_space<vmem>>, vector<8x90xf32>
    %c0_20 = arith.constant 0 : index
    %c11_21 = arith.constant 11 : index
    %26 = vector.load %arg7[%c0_20, %c11_21] : memref<8x108xf32, #tpu.memory_space<vmem>>, vector<8x90xf32>
    %27 = tpu.concatenate %23, %24, %25, %26 in 0 : vector<8x90xf32>, vector<8x90xf32>, vector<8x90xf32>, vector<8x90xf32> -> vector<32x90xf32>
    %c0_22 = arith.constant 0 : index
    %c0_23 = arith.constant 0 : index
    %c0_24 = arith.constant 0 : index
    %28 = vector.load %arg4[%c0_22, %c0_23, %c0_24] : memref<4x4x32xf32, #tpu.memory_space<vmem>>, vector<1x4x32xf32>
    %29 = vector.shape_cast %28 : vector<1x4x32xf32> to vector<4x32xf32>
    %cst_25 = arith.constant dense<0.000000e+00> : vector<4x90xf32>
    %30 = tpu.matmul %29, %27, %cst_25 {dimension_numbers = #tpu.dot_dimension_numbers<[1], [0], [0], [1], [0, 0, 1, 1], [], []>} : vector<4x32xf32>, vector<32x90xf32>, vector<4x90xf32> -> vector<4x90xf32>
    %c0_26 = arith.constant 0 : index
    %c0_27 = arith.constant 0 : index
    %31 = vector.load %arg5[%c0_26, %c0_27] : memref<4x1xf32, #tpu.memory_space<vmem>>, vector<4x1xf32>
    %32 = vector.broadcast %31 : vector<4x1xf32> to vector<4x90xf32>
    %33 = arith.addf %30, %32 : vector<4x90xf32>
    %cst_28 = arith.constant 3.000000e+00 : f32
    %34 = vector.broadcast %cst_28 : f32 to vector<4x90xf32>
    %35 = arith.addf %33, %34 : vector<4x90xf32>
    %cst_29 = arith.constant 0.000000e+00 : f32
    %cst_30 = arith.constant 6.000000e+00 : f32
    %36 = vector.broadcast %cst_29 : f32 to vector<4x90xf32>
    %37 = arith.maximumf %36, %35 : vector<4x90xf32>
    %38 = vector.broadcast %cst_30 : f32 to vector<4x90xf32>
    %39 = arith.minimumf %38, %37 : vector<4x90xf32>
    %40 = arith.mulf %33, %39 : vector<4x90xf32>
    %cst_31 = arith.constant 0.166666672 : f32
    %41 = vector.broadcast %cst_31 : f32 to vector<4x90xf32>
    %42 = arith.mulf %40, %41 : vector<4x90xf32>
    %c0_32 = arith.constant 0 : index
    %c0_33 = arith.constant 0 : index
    %c0_34 = arith.constant 0 : index
    %c0_35 = arith.constant 0 : index
    %43 = vector.load %arg6[%c0_32, %c0_33, %c0_34, %c0_35] : memref<1x4x4x90xf32, #tpu.memory_space<vmem>>, vector<1x1x4x90xf32>
    %44 = vector.shape_cast %43 : vector<1x1x4x90xf32> to vector<4x90xf32>
    %45 = vector.shape_cast %42 : vector<4x90xf32> to vector<1x1x4x90xf32>
    tpu.vector_store %arg6[%c0_32, %c0_33, %c0_34, %c0_35], %45 {strides = array<i32>} : memref<1x4x4x90xf32, #tpu.memory_space<vmem>>, vector<1x1x4x90xf32>,
    %c1_36 = arith.constant 1 : index
    %c0_37 = arith.constant 0 : index
    %c0_38 = arith.constant 0 : index
    %46 = vector.load %arg4[%c1_36, %c0_37, %c0_38] : memref<4x4x32xf32, #tpu.memory_space<vmem>>, vector<1x4x32xf32>
    %47 = vector.shape_cast %46 : vector<1x4x32xf32> to vector<4x32xf32>
    %cst_39 = arith.constant dense<0.000000e+00> : vector<4x90xf32>
    %48 = tpu.matmul %47, %27, %cst_39 {dimension_numbers = #tpu.dot_dimension_numbers<[1], [0], [0], [1], [0, 0, 1, 1], [], []>} : vector<4x32xf32>, vector<32x90xf32>, vector<4x90xf32> -> vector<4x90xf32>
    %c0_40 = arith.constant 0 : index
    %c0_41 = arith.constant 0 : index
    %49 = vector.load %arg5[%c0_40, %c0_41] : memref<4x1xf32, #tpu.memory_space<vmem>>, vector<4x1xf32>
    %50 = vector.broadcast %49 : vector<4x1xf32> to vector<4x90xf32>
    %51 = arith.addf %48, %50 : vector<4x90xf32>
    %cst_42 = arith.constant 3.000000e+00 : f32
    %52 = vector.broadcast %cst_42 : f32 to vector<4x90xf32>
    %53 = arith.addf %51, %52 : vector<4x90xf32>
    %cst_43 = arith.constant 0.000000e+00 : f32
    %cst_44 = arith.constant 6.000000e+00 : f32
    %54 = vector.broadcast %cst_43 : f32 to vector<4x90xf32>
    %55 = arith.maximumf %54, %53 : vector<4x90xf32>
    %56 = vector.broadcast %cst_44 : f32 to vector<4x90xf32>
    %57 = arith.minimumf %56, %55 : vector<4x90xf32>
    %58 = arith.mulf %51, %57 : vector<4x90xf32>
    %cst_45 = arith.constant 0.166666672 : f32
    %59 = vector.broadcast %cst_45 : f32 to vector<4x90xf32>
    %60 = arith.mulf %58, %59 : vector<4x90xf32>
    %c0_46 = arith.constant 0 : index
    %c1_47 = arith.constant 1 : index
    %c0_48 = arith.constant 0 : index
    %c0_49 = arith.constant 0 : index
    %61 = vector.load %arg6[%c0_46, %c1_47, %c0_48, %c0_49] : memref<1x4x4x90xf32, #tpu.memory_space<vmem>>, vector<1x1x4x90xf32>
    %62 = vector.shape_cast %61 : vector<1x1x4x90xf32> to vector<4x90xf32>
    %63 = vector.shape_cast %60 : vector<4x90xf32> to vector<1x1x4x90xf32>
    tpu.vector_store %arg6[%c0_46, %c1_47, %c0_48, %c0_49], %63 {strides = array<i32>} : memref<1x4x4x90xf32, #tpu.memory_space<vmem>>, vector<1x1x4x90xf32>,
    %c2 = arith.constant 2 : index
    %c0_50 = arith.constant 0 : index
    %c0_51 = arith.constant 0 : index
    %64 = vector.load %arg4[%c2, %c0_50, %c0_51] : memref<4x4x32xf32, #tpu.memory_space<vmem>>, vector<1x4x32xf32>
    %65 = vector.shape_cast %64 : vector<1x4x32xf32> to vector<4x32xf32>
    %cst_52 = arith.constant dense<0.000000e+00> : vector<4x90xf32>
    %66 = tpu.matmul %65, %27, %cst_52 {dimension_numbers = #tpu.dot_dimension_numbers<[1], [0], [0], [1], [0, 0, 1, 1], [], []>} : vector<4x32xf32>, vector<32x90xf32>, vector<4x90xf32> -> vector<4x90xf32>
    %c0_53 = arith.constant 0 : index
    %c0_54 = arith.constant 0 : index
    %67 = vector.load %arg5[%c0_53, %c0_54] : memref<4x1xf32, #tpu.memory_space<vmem>>, vector<4x1xf32>
    %68 = vector.broadcast %67 : vector<4x1xf32> to vector<4x90xf32>
    %69 = arith.addf %66, %68 : vector<4x90xf32>
    %cst_55 = arith.constant 3.000000e+00 : f32
    %70 = vector.broadcast %cst_55 : f32 to vector<4x90xf32>
    %71 = arith.addf %69, %70 : vector<4x90xf32>
    %cst_56 = arith.constant 0.000000e+00 : f32
    %cst_57 = arith.constant 6.000000e+00 : f32
    %72 = vector.broadcast %cst_56 : f32 to vector<4x90xf32>
    %73 = arith.maximumf %72, %71 : vector<4x90xf32>
    %74 = vector.broadcast %cst_57 : f32 to vector<4x90xf32>
    %75 = arith.minimumf %74, %73 : vector<4x90xf32>
    %76 = arith.mulf %69, %75 : vector<4x90xf32>
    %cst_58 = arith.constant 0.166666672 : f32
    %77 = vector.broadcast %cst_58 : f32 to vector<4x90xf32>
    %78 = arith.mulf %76, %77 : vector<4x90xf32>
    %c0_59 = arith.constant 0 : index
    %c2_60 = arith.constant 2 : index
    %c0_61 = arith.constant 0 : index
    %c0_62 = arith.constant 0 : index
    %79 = vector.load %arg6[%c0_59, %c2_60, %c0_61, %c0_62] : memref<1x4x4x90xf32, #tpu.memory_space<vmem>>, vector<1x1x4x90xf32>
    %80 = vector.shape_cast %79 : vector<1x1x4x90xf32> to vector<4x90xf32>
    %81 = vector.shape_cast %78 : vector<4x90xf32> to vector<1x1x4x90xf32>
    tpu.vector_store %arg6[%c0_59, %c2_60, %c0_61, %c0_62], %81 {strides = array<i32>} : memref<1x4x4x90xf32, #tpu.memory_space<vmem>>, vector<1x1x4x90xf32>,
    %c3 = arith.constant 3 : index
    %c0_63 = arith.constant 0 : index
    %c0_64 = arith.constant 0 : index
    %82 = vector.load %arg4[%c3, %c0_63, %c0_64] : memref<4x4x32xf32, #tpu.memory_space<vmem>>, vector<1x4x32xf32>
    %83 = vector.shape_cast %82 : vector<1x4x32xf32> to vector<4x32xf32>
    %cst_65 = arith.constant dense<0.000000e+00> : vector<4x90xf32>
    %84 = tpu.matmul %83, %27, %cst_65 {dimension_numbers = #tpu.dot_dimension_numbers<[1], [0], [0], [1], [0, 0, 1, 1], [], []>} : vector<4x32xf32>, vector<32x90xf32>, vector<4x90xf32> -> vector<4x90xf32>
    %c0_66 = arith.constant 0 : index
    %c0_67 = arith.constant 0 : index
    %85 = vector.load %arg5[%c0_66, %c0_67] : memref<4x1xf32, #tpu.memory_space<vmem>>, vector<4x1xf32>
    %86 = vector.broadcast %85 : vector<4x1xf32> to vector<4x90xf32>
    %87 = arith.addf %84, %86 : vector<4x90xf32>
    %cst_68 = arith.constant 3.000000e+00 : f32
    %88 = vector.broadcast %cst_68 : f32 to vector<4x90xf32>
    %89 = arith.addf %87, %88 : vector<4x90xf32>
    %cst_69 = arith.constant 0.000000e+00 : f32
    %cst_70 = arith.constant 6.000000e+00 : f32
    %90 = vector.broadcast %cst_69 : f32 to vector<4x90xf32>
    %91 = arith.maximumf %90, %89 : vector<4x90xf32>
    %92 = vector.broadcast %cst_70 : f32 to vector<4x90xf32>
    %93 = arith.minimumf %92, %91 : vector<4x90xf32>
    %94 = arith.mulf %87, %93 : vector<4x90xf32>
    %cst_71 = arith.constant 0.166666672 : f32
    %95 = vector.broadcast %cst_71 : f32 to vector<4x90xf32>
    %96 = arith.mulf %94, %95 : vector<4x90xf32>
    %c0_72 = arith.constant 0 : index
    %c3_73 = arith.constant 3 : index
    %c0_74 = arith.constant 0 : index
    %c0_75 = arith.constant 0 : index
    %97 = vector.load %arg6[%c0_72, %c3_73, %c0_74, %c0_75] : memref<1x4x4x90xf32, #tpu.memory_space<vmem>>, vector<1x1x4x90xf32>
    %98 = vector.shape_cast %97 : vector<1x1x4x90xf32> to vector<4x90xf32>
    %99 = vector.shape_cast %96 : vector<4x90xf32> to vector<1x1x4x90xf32>
    tpu.vector_store %arg6[%c0_72, %c3_73, %c0_74, %c0_75], %99 {strides = array<i32>} : memref<1x4x4x90xf32, #tpu.memory_space<vmem>>, vector<1x1x4x90xf32>,
    return
  }
  func.func @transform_0(%arg0: i32) -> (i32, i32, i32) {
    %c0_i32 = arith.constant 0 : i32
    %c0_i32_0 = arith.constant 0 : i32
    %c0_i32_1 = arith.constant 0 : i32
    return %arg0, %c0_i32, %c0_i32_0 : i32, i32, i32
  }
  func.func @transform_1(%arg0: i32) -> (i32, i32) {
    %c0_i32 = arith.constant 0 : i32
    %c0_i32_0 = arith.constant 0 : i32
    %c0_i32_1 = arith.constant 0 : i32
    return %c0_i32, %c0_i32_0 : i32, i32
  }
  func.func @transform_2(%arg0: i32) -> (i32, i32) {
    %c0_i32 = arith.constant 0 : i32
    %c0_i32_0 = arith.constant 0 : i32
    %c0_i32_1 = arith.constant 0 : i32
    return %c0_i32, %c0_i32_0 : i32, i32
  }
  func.func @transform_3(%arg0: i32) -> (i32, i32, i32) {
    %c0_i32 = arith.constant 0 : i32
    %c0_i32_0 = arith.constant 0 : i32
    %c0_i32_1 = arith.constant 0 : i32
    %c0_i32_2 = arith.constant 0 : i32
    return %c0_i32, %c0_i32_0, %c0_i32_1 : i32, i32, i32
  }
  func.func @transform_4(%arg0: i32) -> (i32, i32) {
    %c0_i32 = arith.constant 0 : i32
    %c0_i32_0 = arith.constant 0 : i32
    %c0_i32_1 = arith.constant 0 : i32
    return %c0_i32, %c0_i32_0 : i32, i32
  }
  func.func @transform_5(%arg0: i32) -> (i32, i32, i32, i32) {
    %c0_i32 = arith.constant 0 : i32
    %c0_i32_0 = arith.constant 0 : i32
    %c0_i32_1 = arith.constant 0 : i32
    %c0_i32_2 = arith.constant 0 : i32
    return %arg0, %c0_i32, %c0_i32_0, %c0_i32_1 : i32, i32, i32, i32
  }
}

</mosaic_0001>

<bundles_post_ra>
// kernel: reverse
= control target key start
LH: loop header
LB: loop body
LE: loop exit
PB: predicated region body
PF: predicated region fallthrough
CT: control target
= control target key end

     0   :  { %v63_v4 = vld [vmem:[#allocation1 + $0x18] sm:$0xf]  ;;  %v73_v5 = vld [vmem:[#allocation1 + $0x10] sm:$0xf]  ;;  %v83_v6 = vld [vmem:[#allocation1 + $0x8] sm:$0xf]  ;;  %v101_v8 = vlaneseq  ;;  %s274_s0 = inlined_call_operand.vmem [shape: f32[1,1,4,4], index: 0, kind: input, shape index: {}]   ;;  %s275_s1 = inlined_call_operand.vmem [shape: f32[1,1,4,4], index: 1, kind: output, shape index: {}]  }
   0x1   :  { %v18_v0 = vld [vmem:[%s274_s0] sm:$0xf]  ;;  %v20_v1 = vld [vmem:[%s274_s0 + $0x4] sm:$0xf]  ;;  %v22_v2 = vld [vmem:[%s274_s0 + $0x8] sm:$0xf] }
   0x2   :  { %19 = vst [vmem:[#allocation1 + $0x4] sm:$0xf] %v18_v0  ;;  %21 = vst [vmem:[#allocation1 + $0xc] sm:$0xf] %v20_v1  ;;  %v24_v3 = vld [vmem:[%s274_s0 + $0xc] sm:$0xf] }
   0x3   :  { %23 = vst [vmem:[#allocation1 + $0x14] sm:$0xf] %v22_v2  ;;  %25 = vst [vmem:[#allocation1 + $0x1c] sm:$0xf] %v24_v3  ;;  %v90_v7 = vld [vmem:[#allocation1] sm:$0xf] }
   0x4   :  { %65 = vst [vmem:[#allocation0 + $0x30] sm:$0xf] %v63_v4  ;;  %75 = vst [vmem:[#allocation0 + $0x20] sm:$0xf] %v73_v5  ;;  %v102_v19 = vshrl.u32 %v101_v8, 7 }
   0x5   :  { %85 = vst [vmem:[#allocation0 + $0x10] sm:$0xf] %v83_v6  ;;  %91 = vst [vmem:[#allocation0] sm:$0xf] %v90_v7 }
   0x6   :  { %vm103_vm0 = vcmp.lt.s32.totalorder %v102_v19, 4 }
   0x9   :  { %v78_v10 = vld [vmem:[#allocation1 + $0xc] sm:$0xf]  ;;  %v87_v11 = vld [vmem:[#allocation1 + $0x4] sm:$0xf] }
   0xa   :  { %v68_v9 = vld [vmem:[#allocation1 + $0x14] sm:$0xf]  ;;  %v58_v12 = vld [vmem:[#allocation1 + $0x1c] sm:$0xf]  ;;  %80 = vst [vmem:[#allocation0 + $0x18] sm:$0xf] %v78_v10 }
   0xb   :  { %70 = vst [vmem:[#allocation0 + $0x28] sm:$0xf] %v68_v9  ;;  %89 = vst [vmem:[#allocation0 + $0x8] sm:$0xf] %v87_v11  ;;  %v94_v13 = vld [vmem:[#allocation0 + $0x37] ss:$-1 sm:$0xff] }
   0xc   :  { %v108_v14 = vld [vmem:[#allocation0 + $0x27] ss:$-1 sm:$0xff]  ;;  %60 = vst [vmem:[#allocation0 + $0x38] sm:$0xf] %v58_v12  ;;  %v95_v15 = vrot.slane %v94_v13, 4 }
   0xd   :  { %v109_v16 = vrot.slane %v108_v14, 4  ;;  %v122_v17 = vld [vmem:[#allocation0 + $0x17] ss:$-1 sm:$0xff]  ;;  %v135_v18 = vld [vmem:[#allocation0 + $0x7] ss:$-1 sm:$0xff] }
   0xe   :  { %v123_v20 = vrot.slane %v122_v17, 4  ;;  %v136_v21 = vrot.slane %v135_v18, 4  ;;  %96 = vst [vmem:[#allocation2] sm:$0xff] %v95_v15 }
   0xf   :  { %110 = vst [vmem:[#allocation2 + $0x8] sm:$0xff] %v109_v16 }
  0x10   :  { %124 = vst [vmem:[#allocation2 + $0x10] sm:$0xff] %v123_v20  ;;  %137 = vst [vmem:[#allocation2 + $0x18] sm:$0xff] %v136_v21 }
  0x11   :  { %v127_v23 = vld [vmem:[#allocation0 + $0x1f] ss:$-1 sm:$0xff] }
  0x12   :  { %v113_v22 = vld [vmem:[#allocation0 + $0x2f] ss:$-1 sm:$0xff]  ;;  %v128_v27 = vrot.slane %v127_v23, 4 }
  0x13   :  { %v140_v24 = vld [vmem:[#allocation0 + $0xf] ss:$-1 sm:$0xff]  ;;  %v99_v25 = vld [vmem:[#allocation0 + $0x3f] ss:$-1 sm:$0xff]  ;;  %v114_v26 = vrot.slane %v113_v22, 4 }
  0x14   :  { %v141_v28 = vrot.slane %v140_v24, 4  ;;  %v100_v29 = vrot.slane %v99_v25, 4  ;;  %132 = vst.msk [vmem:[#allocation2 + $0x10] sm:$0xff] %vm103_vm0, %v128_v27 }
  0x15   :  { %118 = vst.msk [vmem:[#allocation2 + $0x8] sm:$0xff] %vm103_vm0, %v114_v26 }
  0x16   :  { %145 = vst.msk [vmem:[#allocation2 + $0x18] sm:$0xff] %vm103_vm0, %v141_v28  ;;  %104 = vst.msk [vmem:[#allocation2] sm:$0xff] %vm103_vm0, %v100_v29 }
  0x1b   :  { %v158_v31 = vld [vmem:[#allocation2 + $0x10] sm:$0xf] }
  0x1c   :  { %v153_v30 = vld [vmem:[#allocation2 + $0x8] sm:$0xf]  ;;  %162 = vst [vmem:[#allocation3 + $0x8] sm:$0xf] %v158_v31 }
  0x1d   :  { %v164_v32 = vld [vmem:[#allocation2 + $0x18] sm:$0xf]  ;;  %v149_v33 = vld [vmem:[#allocation2] sm:$0xf]  ;;  %156 = vst [vmem:[#allocation3 + $0x4] sm:$0xf] %v153_v30 }
  0x1e   :  { %168 = vst [vmem:[#allocation3 + $0xc] sm:$0xf] %v164_v32  ;;  %151 = vst [vmem:[#allocation3] sm:$0xf] %v149_v33 }
  0x25   :  { %v188_v34 = vld [vmem:[#allocation3 + $0x8] sm:$0xff]   ;;  %v184_v35 = vld [vmem:[#allocation3] sm:$0xff]  }
  0x26   :  { %189 = vst [vmem:[%s275_s1 + $0x8] sm:$0xff] %v188_v34   ;;  %185 = vst [vmem:[%s275_s1] sm:$0xff] %v184_v35  }

// kernel: model_forward.1
= control target key start
LH: loop header
LB: loop body
LE: loop exit
PB: predicated region body
PF: predicated region fallthrough
CT: control target
= control target key end

     0   :  { %s986_s18 = smov 0   ;;  %s1067_s0 = inlined_call_operand.vmem [shape: f32[2,48,49], index: 0, kind: input, shape index: {}]   ;;  %s1068_s1 = inlined_call_operand.vmem [shape: f32[8,48], index: 1, kind: input, shape index: {}]   ;;  %s1069_s2 = inlined_call_operand.vmem [shape: f32[8,1], index: 2, kind: input, shape index: {}]   ;;  %s1070_s3 = inlined_call_operand.vmem [shape: f32[4,4,32], index: 3, kind: input, shape index: {}]   ;;  %s1071_s4 = inlined_call_operand.vmem [shape: f32[4,1], index: 4, kind: input, shape index: {}]   ;;  %s1072_s5 = inlined_call_operand.vmem [shape: f32[2,4,4,90], index: 5, kind: output, shape index: {}]  }
   0x1 LB: > { %s768_s19 = sadd.s32 4294967295, %s940_s18   ;;  %p772_p0 = scmp.ge.s32.totalorder %s940_s18, 1  ;;  %s940_s18 = sphi %s986_s18, %s15_s18  }
   0x2   : > { %p187_p1 = scmp.lt.s32.totalorder %s940_s18, 3 }
   0x4   : > { %p188_p2 = pnand %p772_p0, %p187_p1 }
   0x5   : > { %p215_p3 = scmp.lt.s32.totalorder (!%p188_p2), %s768_s19, 1  ;;  %v942_v0 = vmov (!%p188_p2), 0.0|0.0   ;;  %vm943_vm0 = vmmov (!%p188_p2), 0   ;;  %v944_v1 = vmov (!%p188_p2), 0.0   ;;  %v232_v2 = vld [vmem:[%s1069_s2] sm:$0xff] (!%p188_p2)  ;;  %v945_v3 = vmov (!%p188_p2), 0  }
   0x6   : > { %191 = sbr.rel (%p188_p2) target bundleno = 745 (0x2e9), region = 40  ;;  %876 = vmatprep.subr.bf16.mxu0 (!%p188_p2), %v942_v0  ;;  %829 = vmatprep.mubr.msk.f32.mxu0 (!%p188_p2), %vm943_vm0, %v944_v1  ;;  %v225_v13 = vld [vmem:[%s1068_s1] sm:$0xff] (!%p188_p2)  ;;  %vm238_vm1 = vcmask (!%p188_p2), 392192   ;;  %vm312_vm2 = vcmask (!%p188_p2), 883712   ;;  %s946_s28 = smov (!%p188_p2), 14   ;;  %vm318_vm3 = vcmask (!%p188_p2), 146520  }
   0x7   : > { %932 = vset.pattern.permute.xlu0 (!%p188_p2), %v945_v3  ;;  %885 = vmatprep.subr.bf16.mxu1 (!%p188_p2), %v942_v0  ;;  %313 = vst.msk [vmem:[#allocation2] sm:$0xff] (!%p188_p2), %vm312_vm2, %v944_v1  ;;  %s947_s29 = smov (!%p188_p2), 11   ;;  %s948_s30 = smov (!%p188_p2), 17   ;;  %vm323_vm4 = vcmask (!%p188_p2), 228520   ;;  %vm328_vm5 = vcmask (!%p188_p2), 310520   ;;  %vm333_vm6 = vcmask (!%p188_p2), 392520  }
   0x8   : > { %235 = vperm.xlu0 (!%p188_p2), %932, %v232_v2   ;;  %840 = vmatprep.mubr.msk.f32.mxu1 (!%p188_p2), %vm943_vm0, %v944_v1  ;;  %s949_s6 = smov (!%p188_p2), 20   ;;  %s950_s7 = smov (!%p188_p2), 23   ;;  %vm338_vm7 = vcmask (!%p188_p2), 474520   ;;  %vm343_vm8 = vcmask (!%p188_p2), 556520   ;;  %vm348_vm9 = vcmask (!%p188_p2), 638520   ;;  %vm368_vm10 = vcmask (!%p188_p2), 261120  }
   0x9   : > { %933 = vset.pattern.permute.xlu1 (!%p188_p2), %v945_v3  ;;  %s951_s8 = smov (!%p188_p2), 26   ;;  %s952_s9 = smov (!%p188_p2), 29   ;;  %v451_v26 = vld [vmem:[%s1071_s4] sm:$0xf] (!%p188_p2)  ;;  %v781_v36 = vld [vmem:[%s1070_s3 + $0x8] sm:$0xf] (!%p188_p2) }
   0xa   : > { %s953_s10 = smov (!%p188_p2), 118   ;;  %s954_s11 = smov (!%p188_p2), 127   ;;  %v627_v27 = vld [vmem:[%s1071_s4] sm:$0xf] (!%p188_p2)  ;;  %v778_v37 = vld [vmem:[%s1070_s3 + $0x4] sm:$0xf] (!%p188_p2) }
   0xb   : > { %s955_s12 = smov (!%p188_p2), 117   ;;  %v362_v28 = vld [vmem:[%s1071_s4] sm:$0xf] (!%p188_p2)  ;;  %v784_v38 = vld [vmem:[%s1070_s3 + $0xc] sm:$0xf] (!%p188_p2)  ;;  %vm447_vm11 = vcmask (!%p188_p2), 732160  }
   0xc   : > { %v539_v29 = vld [vmem:[%s1071_s4] sm:$0xf] (!%p188_p2) }
   0xd   : > { %s1074_s19 = smov (!%p215_p3, %s768_s19), 1  ;;  %v361_v35 = vld [vmem:[%s1070_s3] sm:$0xf] }
   0xe   : > { %s909_s22 = smul.u32 48, %s1074_s19 }
  0x10   : > { %s219_s25 = scalar_lea.vmem %s1067_s0, %s909_s22 }
  0x11   : > { %v226_v4 = vld [vmem:[%s219_s25] sm:$0xff]  ;;  %v227_v5 = vld [vmem:[%s219_s25 + $0x8] sm:$0xff]  ;;  %v228_v6 = vld [vmem:[%s219_s25 + $0x10] sm:$0xff] }
  0x12   : > { %v877_v7 = vpack.c.bf16 %v227_v5, %v226_v4  ;;  %v229_v8 = vld [vmem:[%s219_s25 + $0x18] sm:$0xff]  ;;  %v230_v10 = vld [vmem:[%s219_s25 + $0x20] sm:$0xff]  ;;  %v231_v11 = vld [vmem:[%s219_s25 + $0x28] sm:$0xff] }
  0x13   : > { %v880_v9 = vpack.c.bf16 %v229_v8, %v228_v6  ;;  %v883_v12 = vpack.c.bf16 %v231_v11, %v230_v10 }
  0x14   : > { %878 = vmatpush3.bf16.msra.mxu0 %v877_v7 }
  0x15   : > { %879 = vmatprep.subr.bf16.mxu0 %v942_v0 }
  0x18   : > { %881 = vmatpush3.bf16.msra.mxu0 %v880_v9 }
  0x19   : > { %882 = vmatprep.subr.bf16.mxu0 %v942_v0 }
  0x1c   : > { %884 = vmatpush3.bf16.msra.mxu0 %v883_v12 }
  0x1d   : > { %897 = vmatprep.subr.bf16.mxu0 %v942_v0 }
  0x1f   : > { %830 = vmatmul.mubr.msk.f32.vlgmr.msra.gmra.mrb[0].mxu0 %vm238_vm1, %v225_v13 }
  0x20   : > { %862 = vmatprep.mubr.msk.f32.mxu0 %vm943_vm0, %v944_v1 }
  0x87   : > { %v236_v14 = vpop.permute.xlu0 %235 }
  0xf2   : > { %v308_v15 = vpop.f32.mrb[0].mxu0 }
  0xf3   : > { %v309_v16 = vadd.f32 %v308_v15, %v236_v14  ;;  %v831_v17 = vpop.f32.mrb[1].mxu0 }
  0xf5   : > { %320 = vrot.lane.b32.xlu1 %v309_v16, %s946_s28  ;;  %315 = vrot.lane.b32.xlu0 %v309_v16, %s947_s29 }
  0xf9   : > { %325 = vrot.lane.b32.xlu1 %v309_v16, %s948_s30  ;;  %330 = vrot.lane.b32.xlu0 %v309_v16, %s949_s6  ;;  %s789_s6 = sshll.u32 %s1074_s19, 4 }
  0xfd   : > { %335 = vrot.lane.b32.xlu1 %v309_v16, %s950_s7  ;;  %340 = vrot.lane.b32.xlu0 %v309_v16, %s951_s8 }
 0x101   : > { %345 = vrot.lane.b32.xlu1 %v309_v16, %s952_s9  ;;  %s224_s9 = scalar_lea.vmem %s1072_s5, %s789_s6 }
 0x167   : > { %v321_v18 = vpop.permute.xlu1 %320  ;;  %v316_v19 = vpop.permute.xlu0 %315 }
 0x168   : > { %319 = vst.msk [vmem:[#allocation2] sm:$0xff] %vm318_vm3, %v316_v19 }
 0x169   : > { %324 = vst.msk [vmem:[#allocation2] sm:$0xff] %vm323_vm4, %v321_v18 }
 0x16b   : > { %v326_v20 = vpop.permute.xlu1 %325  ;;  %v331_v21 = vpop.permute.xlu0 %330 }
 0x16c   : > { %329 = vst.msk [vmem:[#allocation2] sm:$0xff] %vm328_vm5, %v326_v20 }
 0x16d   : > { %334 = vst.msk [vmem:[#allocation2] sm:$0xff] %vm333_vm6, %v331_v21 }
 0x16f   : > { %v336_v22 = vpop.permute.xlu1 %335  ;;  %v341_v23 = vpop.permute.xlu0 %340 }
 0x170   : > { %339 = vst.msk [vmem:[#allocation2] sm:$0xff] %vm338_vm7, %v336_v22 }
 0x171   : > { %344 = vst.msk [vmem:[#allocation2] sm:$0xff] %vm343_vm8, %v341_v23 }
 0x173   : > { %v346_v24 = vpop.permute.xlu1 %345 }
 0x174   : > { %349 = vst.msk [vmem:[#allocation2] sm:$0xff] %vm348_vm9, %v346_v24 }
 0x17b   : > { %v350_v25 = vld [vmem:[#allocation2] sm:$0xff] }
 0x17c   : > { %355 = vrot.lane.b32.xlu1 %v350_v25, %s953_s10  ;;  %352 = vrot.lane.b32.xlu0 %v350_v25, %s954_s11 }
 0x180   : > { %358 = vrot.lane.b32.xlu0 %v350_v25, %s955_s12  ;;  %365 = vperm.xlu1 %933, %v362_v28  }
 0x184   : > { %454 = vperm.xlu0 %932, %v451_v26   ;;  %542 = vperm.xlu1 %933, %v539_v29  }
 0x188   : > { %630 = vperm.xlu0 %932, %v627_v27  }
 0x1ee   : > { %v353_v30 = vpop.permute.xlu0 %352  ;;  %v356_v32 = vpop.permute.xlu1 %355 }
 0x1ef   : > { %v886_v31 = vpack.c.bf16 %v353_v30, %v350_v25 }
 0x1f1   : > { %887 = vmatpush3.bf16.msra.mxu1 %v886_v31  ;;  %899 = vmatpush3.bf16.msra.mxu0 %v886_v31 }
 0x1f2   : > { %v359_v33 = vpop.permute.xlu0 %358  ;;  %888 = vmatprep.subr.bf16.mxu1 %v942_v0  ;;  %900 = vmatprep.subr.bf16.mxu0 %v942_v0 }
 0x1f3   : > { %v889_v34 = vpack.c.bf16 %v359_v33, %v356_v32 }
 0x1f5   : > { %890 = vmatpush3.bf16.msra.mxu1 %v889_v34  ;;  %902 = vmatpush3.bf16.msra.mxu0 %v889_v34 }
 0x1f6   : > { %891 = vmatprep.subr.bf16.mxu1 %v942_v0 }
 0x1f8   : > { %841 = vmatmul.mubr.msk.f32.vlgmr.msra.gmra.mrb[0].mxu1 %vm368_vm10, %v361_v35  ;;  %863 = vmatmul.mubr.msk.f32.vlgmr.msra.gmra.mrb[2].mxu0 %vm368_vm10, %v781_v36 }
 0x1f9   : > { %893 = vmatpush3.bf16.msra.mxu1 %v886_v31  ;;  %851 = vmatprep.mubr.msk.f32.mxu1 %vm943_vm0, %v944_v1 }
 0x1fa   : > { %894 = vmatprep.subr.bf16.mxu1 %v942_v0 }
 0x1fd   : > { %896 = vmatpush3.bf16.msra.mxu1 %v889_v34 }
 0x1fe   : > { %903 = vmatprep.subr.bf16.mxu1 %v942_v0 }
 0x1ff   : > { %v366_v39 = vpop.permute.xlu1 %365 }
 0x200   : > { %852 = vmatmul.mubr.msk.f32.vlgmr.msra.gmra.mrb[2].mxu1 %vm368_vm10, %v778_v37 }
 0x201   : > { %905 = vmatpush3.bf16.msra.mxu1 %v886_v31  ;;  %873 = vmatprep.mubr.msk.f32.mxu1 %vm943_vm0, %v944_v1 }
 0x202   : > { %906 = vmatprep.subr.bf16.mxu1 %v942_v0 }
 0x203   : > { %v543_v40 = vpop.permute.xlu1 %542  ;;  %v455_v53 = vpop.permute.xlu0 %454 }
 0x205   : > { %908 = vmatpush3.bf16.msra.mxu1 %v889_v34 }
 0x207   : > { %v631_v0 = vpop.permute.xlu0 %630 }
 0x208   : > { %874 = vmatmul.mubr.msk.f32.vlgmr.msra.gmra.mrb[4].mxu1 %vm368_vm10, %v784_v38 }
 0x2cb   : > { %v438_v41 = vpop.f32.mrb[0].mxu1  ;;  %v614_v42 = vpop.f32.mrb[2].mxu0 }
 0x2cc   : > { %v439_v43 = vadd.f32 %v438_v41, %v366_v39  ;;  %v842_v44 = vpop.f32.mrb[1].mxu1  ;;  %v615_v45 = vadd.f32 %v614_v42, %v543_v40  ;;  %v864_v46 = vpop.f32.mrb[3].mxu0 }
 0x2ce   : > { %v442_v47 = vadd.f32 3.0, %v439_v43  ;;  %v618_v48 = vadd.f32 3.0, %v615_v45 }
 0x2d0   : > { %v443_v49 = vmax.f32 %v442_v47, 0.0  ;;  %v619_v50 = vmax.f32 %v618_v48, 0.0 }
 0x2d2   : > { %v444_v51 = vmin.f32 %v443_v49, 6.0  ;;  %v620_v52 = vmin.f32 %v619_v50, 6.0 }
 0x2d3   : > { %v526_v54 = vpop.f32.mrb[2].mxu1 }
 0x2d4   : > { %v445_v55 = vmul.f32 %v444_v51, %v439_v43  ;;  %v621_v56 = vmul.f32 %v620_v52, %v615_v45  ;;  %v527_v57 = vadd.f32 %v526_v54, %v455_v53  ;;  %v853_v58 = vpop.f32.mrb[3].mxu1 }
 0x2d6   : > { %v446_v59 = vmul.f32 0.16666667, %v445_v55  ;;  %v622_v60 = vmul.f32 0.16666667, %v621_v56  ;;  %v530_v61 = vadd.f32 3.0, %v527_v57 }
 0x2d8   : > { %448 = vst.msk [vmem:[%s224_s9] sm:$0xf] %vm447_vm11, %v446_v59  ;;  %783 = vst.msk [vmem:[%s224_s9 + $0x8] sm:$0xf] %vm447_vm11, %v622_v60  ;;  %v531_v62 = vmax.f32 %v530_v61, 0.0 }
 0x2da   : > { %v532_v63 = vmin.f32 %v531_v62, 6.0 }
 0x2db   : > { %v702_v1 = vpop.f32.mrb[4].mxu1 }
 0x2dc   : > { %v533_v2 = vmul.f32 %v532_v63, %v527_v57  ;;  %v703_v3 = vadd.f32 %v702_v1, %v631_v0  ;;  %v875_v4 = vpop.f32.mrb[5].mxu1 }
 0x2de   : > { %v534_v5 = vmul.f32 0.16666667, %v533_v2  ;;  %v706_v6 = vadd.f32 3.0, %v703_v3 }
 0x2e0   : > { %780 = vst.msk [vmem:[%s224_s9 + $0x4] sm:$0xf] %vm447_vm11, %v534_v5  ;;  %v707_v7 = vmax.f32 %v706_v6, 0.0 }
 0x2e2   : > { %v708_v8 = vmin.f32 %v707_v7, 6.0 }
 0x2e4   : > { %v709_v9 = vmul.f32 %v708_v8, %v703_v3 }
 0x2e6   : > { %v710_v10 = vmul.f32 0.16666667, %v709_v9 }
 0x2e8   : > { %786 = vst.msk [vmem:[%s224_s9 + $0xc] sm:$0xf] %vm447_vm11, %v710_v10 }
 0x2e9 PF: > { %s15_s18 = sadd.s32 1, %s940_s18  }
 0x2ea   : > { %p12_p4 = scmp.ge.s32.totalorder %s15_s18, 4  }
 0x2ec   :  { %14 = sbr.rel (!%p12_p4) target bundleno = 1 (0x1), region = 76 }

</bundles_post_ra>
